<compile_context>
chip_gen: v7x
topology: tpu7x:2x2x1
jax: 0.10.0
libtpu: 0.0.40
codegen_flags: <defaults>
</compile_context>

<pallas_src>
import functools

import jax
import jax.numpy as jnp
from jax.experimental import pallas as pl
from jax.experimental.pallas import tpu as pltpu

PRIMITIVES = [
    'none', 'max_pool_3x3', 'avg_pool_3x3', 'skip_connect',
    'sep_conv_3x3', 'sep_conv_5x5', 'sep_conv_7x7',
    'dil_conv_3x3', 'dil_conv_5x5', 'conv_7x1_1x7',
]
K_LIST = [4, 4, 4, 4, 4, 4, 4, 4]
BN_EPS = 1e-5


def _round_up(x, m):
    return (x + m - 1) // m * m


def _pair(v):
    return (v, v) if isinstance(v, int) else tuple(v)


def _choose_rows(M, max_tile=512, align=8):
    """Pick (padded M, row tile) — one tile for small M, 512-row tiles else."""
    Mp = _round_up(M, align)
    if Mp <= max_tile:
        return Mp, Mp
    return _round_up(M, max_tile), max_tile


# ----------------------------------------------------------------------------
# Pallas MXU matmul: bf16 operands, f32 accumulation, optional fused ReLU on A
# ----------------------------------------------------------------------------
def _matmul_kernel(a_ref, b_ref, o_ref, acc_ref, *, relu_a):
    @pl.when(pl.program_id(2) == 0)
    def _():
        acc_ref[...] = jnp.zeros_like(acc_ref)

    a = a_ref[...]
    if relu_a:
        a = jnp.maximum(a, 0)
    acc_ref[...] += jnp.dot(a, b_ref[...], preferred_element_type=jnp.float32)

    @pl.when(pl.program_id(2) == pl.num_programs(2) - 1)
    def _():
        o_ref[...] = acc_ref[...].astype(o_ref.dtype)


@functools.lru_cache(maxsize=None)
def _matmul_call(Mp, Kp, Np, TM, TN, TK, relu_a):
    kernel = functools.partial(_matmul_kernel, relu_a=relu_a)
    f = pl.pallas_call(
        kernel,
        out_shape=jax.ShapeDtypeStruct((Mp, Np), jnp.float32),
        grid=(Mp // TM, Np // TN, Kp // TK),
        in_specs=[pl.BlockSpec((TM, TK), lambda i, j, k: (i, k)),
                  pl.BlockSpec((TK, TN), lambda i, j, k: (k, j))],
        out_specs=pl.BlockSpec((TM, TN), lambda i, j, k: (i, j)),
        scratch_shapes=[pltpu.VMEM((TM, TN), jnp.float32)],
        compiler_params=pltpu.CompilerParams(
            dimension_semantics=("parallel", "parallel", "arbitrary")),
    )
    return jax.jit(f)


def pallas_matmul(a, b_bf16, relu_a=False):
    """a(f32) @ b(bf16) -> f32, MXU kernel with zero padding to tile sizes."""
    M, K = a.shape
    K2, N = b_bf16.shape
    assert K == K2
    a = a.astype(jnp.bfloat16)
    TK = min(512, _round_up(K, 128))
    Kp = _round_up(K, TK)
    TN = min(256, _round_up(N, 128))
    Np = _round_up(N, TN)
    Mp, TM = _choose_rows(M, max_tile=512, align=16)
    ap = a if (Mp == M and Kp == K) else jnp.pad(a, ((0, Mp - M), (0, Kp - K)))
    bp = (b_bf16 if (Kp == K and Np == N)
          else jnp.pad(b_bf16, ((0, Kp - K), (0, Np - N))))
    out = _matmul_call(Mp, Kp, Np, TM, TN, TK, bool(relu_a))(ap, bp)
    if Mp != M or Np != N:
        out = out[:M, :N]
    return out


# ----------------------------------------------------------------------------
# Pallas depthwise conv (VPU): accumulate K*K shifted slices per channel
# ----------------------------------------------------------------------------
def _dw_kernel(x_ref, w_ref, o_ref, *, K, d, relu_x):
    x = x_ref[0]                                   # (Hp, Wp, C) f32
    if relu_x:
        x = jnp.maximum(x, 0.0)
    Ho, Wo = o_ref.shape[1], o_ref.shape[2]
    w = w_ref[...]                                 # (K*K, C)
    acc = None
    for kh in range(K):
        for kw in range(K):
            sl = x[kh * d:kh * d + Ho, kw * d:kw * d + Wo, :]
            term = sl * w[kh * K + kw, :]
            acc = term if acc is None else acc + term
    o_ref[0] = acc


@functools.lru_cache(maxsize=None)
def _dw_call(N, Hp, Wp, C, Ho, Wo, K, d, relu_x):
    kernel = functools.partial(_dw_kernel, K=K, d=d, relu_x=relu_x)
    f = pl.pallas_call(
        kernel,
        out_shape=jax.ShapeDtypeStruct((N, Ho, Wo, C), jnp.float32),
        grid=(N,),
        in_specs=[pl.BlockSpec((1, Hp, Wp, C), lambda n: (n, 0, 0, 0)),
                  pl.BlockSpec((K * K, C), lambda n: (0, 0))],
        out_specs=pl.BlockSpec((1, Ho, Wo, C), lambda n: (n, 0, 0, 0)),
        compiler_params=pltpu.CompilerParams(
            dimension_semantics=("parallel",)),
    )
    return jax.jit(f)


def depthwise_conv(x, wp, stride=1, padding=0, dilation=1, relu=False):
    """Depthwise conv in NHWC via the Pallas VPU kernel (no CxC blowup)."""
    N, H, W, C = x.shape
    K = wp['k']
    xp = jnp.pad(x, ((0, 0), (padding, padding), (padding, padding), (0, 0)))
    Hp, Wp = H + 2 * padding, W + 2 * padding
    Ho1 = Hp - dilation * (K - 1)
    Wo1 = Wp - dilation * (K - 1)
    out = _dw_call(N, Hp, Wp, C, Ho1, Wo1, K, dilation, bool(relu))(xp, wp['w'])
    if stride > 1:
        out = out[:, ::stride, ::stride, :]   # stride-s conv == subsampled s=1
    return out


# ----------------------------------------------------------------------------
# Pallas BatchNorm (training-mode batch stats, identity affine), NHWC layout
# ----------------------------------------------------------------------------
def _bn_stats_kernel(x_ref, stat_ref, *, m, eps):
    i = pl.program_id(0)

    @pl.when(i == 0)
    def _():
        stat_ref[...] = jnp.zeros_like(stat_ref)

    x = x_ref[...]                                 # (TM, C), padded rows are 0
    s = jnp.sum(x, axis=0)
    ss = jnp.sum(x * x, axis=0)
    stat_ref[...] = stat_ref[...] + jnp.stack([s, ss], axis=0)

    @pl.when(i == pl.num_programs(0) - 1)
    def _():
        st = stat_ref[...]
        mean = st[0] / m
        var = st[1] / m - mean * mean
        stat_ref[...] = jnp.stack([mean, jax.lax.rsqrt(var + eps)], axis=0)


def _bn_norm_kernel(x_ref, stat_ref, o_ref):
    st = stat_ref[...]
    o_ref[...] = (x_ref[...] - st[0, :]) * st[1, :]


@functools.lru_cache(maxsize=None)
def _bn_stats_call(Mp, C, TM, m):
    kernel = functools.partial(_bn_stats_kernel, m=float(m), eps=BN_EPS)
    f = pl.pallas_call(
        kernel,
        out_shape=jax.ShapeDtypeStruct((2, C), jnp.float32),
        grid=(Mp // TM,),
        in_specs=[pl.BlockSpec((TM, C), lambda i: (i, 0))],
        out_specs=pl.BlockSpec((2, C), lambda i: (0, 0)),
        compiler_params=pltpu.CompilerParams(
            dimension_semantics=("arbitrary",)),
    )
    return jax.jit(f)


@functools.lru_cache(maxsize=None)
def _bn_norm_call(Mp, C, TM):
    f = pl.pallas_call(
        _bn_norm_kernel,
        out_shape=jax.ShapeDtypeStruct((Mp, C), jnp.float32),
        grid=(Mp // TM,),
        in_specs=[pl.BlockSpec((TM, C), lambda i: (i, 0)),
                  pl.BlockSpec((2, C), lambda i: (0, 0))],
        out_specs=pl.BlockSpec((TM, C), lambda i: (i, 0)),
        compiler_params=pltpu.CompilerParams(
            dimension_semantics=("parallel",)),
    )
    return jax.jit(f)


def batch_norm(x):
    """BatchNorm2d (training batch stats, affine-free / identity affine)."""
    N, H, W, C = x.shape
    M = N * H * W
    xm = x.reshape(M, C).astype(jnp.float32)
    Mp, TM = _choose_rows(M)
    xp = xm if Mp == M else jnp.pad(xm, ((0, Mp - M), (0, 0)))
    stats = _bn_stats_call(Mp, C, TM, M)(xp)
    out = _bn_norm_call(Mp, C, TM)(xp, stats)
    if Mp != M:
        out = out[:M]
    return out.reshape(N, H, W, C)


# ----------------------------------------------------------------------------
# Dense conv (im2col + Pallas matmul) and pooling helpers, NHWC
# ----------------------------------------------------------------------------
# TODO(synk): im2col patches are still materialized in HBM; moving the gather
# into the matmul kernel (index_map / manual DMA) is left out for simplicity.
def conv2d(x, wp, stride=1, padding=0, dilation=1, relu=False):
    sh, sw = _pair(stride)
    ph, pw_ = _pair(padding)
    dh, dw_ = _pair(dilation)
    N, H, W, Cin = x.shape
    Kh, Kw, Cout = wp['kh'], wp['kw'], wp['cout']
    Ho = (H + 2 * ph - dh * (Kh - 1) - 1) // sh + 1
    Wo = (W + 2 * pw_ - dw_ * (Kw - 1) - 1) // sw + 1
    if Kh == 1 and Kw == 1 and sh == 1 and sw == 1 and ph == 0 and pw_ == 0:
        a = x.reshape(N * H * W, Cin)
    else:
        xp = jnp.pad(x, ((0, 0), (ph, ph), (pw_, pw_), (0, 0)))
        cols = []
        for kh in range(Kh):
            for kw in range(Kw):
                h0, w0 = kh * dh, kw * dw_
                cols.append(xp[:, h0:h0 + (Ho - 1) * sh + 1:sh,
                                  w0:w0 + (Wo - 1) * sw + 1:sw, :])
        a = jnp.stack(cols, axis=3).reshape(N * Ho * Wo, Kh * Kw * Cin)
    out = pallas_matmul(a, wp['w'], relu_a=relu)           # (M, Cout) f32
    return out.reshape(N, Ho, Wo, Cout)


def _shifted_slices(xp, K, stride, Ho, Wo):
    out = []
    for kh in range(K):
        for kw in range(K):
            out.append(xp[:, kh:kh + (Ho - 1) * stride + 1:stride,
                             kw:kw + (Wo - 1) * stride + 1:stride, :])
    return out


def max_pool3(x, stride):
    # TODO(synk): window pooling kept as plain-JAX glue (tiny tensors).
    N, H, W, C = x.shape
    Ho = (H + 2 - 3) // stride + 1
    Wo = (W + 2 - 3) // stride + 1
    xp = jnp.pad(x, ((0, 0), (1, 1), (1, 1), (0, 0)),
                 constant_values=-jnp.inf)
    sl = _shifted_slices(xp, 3, stride, Ho, Wo)
    out = sl[0]
    for s in sl[1:]:
        out = jnp.maximum(out, s)
    return out


def avg_pool3(x, stride):
    # count_include_pad=False semantics
    N, H, W, C = x.shape
    Ho = (H + 2 - 3) // stride + 1
    Wo = (W + 2 - 3) // stride + 1
    xp = jnp.pad(x, ((0, 0), (1, 1), (1, 1), (0, 0)))
    op = jnp.pad(jnp.ones((1, H, W, 1), jnp.float32),
                 ((0, 0), (1, 1), (1, 1), (0, 0)))
    s = sum(_shifted_slices(xp, 3, stride, Ho, Wo))
    cnt = sum(_shifted_slices(op, 3, stride, Ho, Wo))
    return s / cnt


def max_pool2(x):
    N, H, W, C = x.shape
    return x.reshape(N, H // 2, 2, W // 2, 2, C).max(axis=(2, 4))


def factorized_reduce(p, x):
    a = conv2d(x[:, ::2, ::2, :], p['fr1'], relu=True)
    b = conv2d(x[:, 1::2, 1::2, :], p['fr2'], relu=True)
    return batch_norm(jnp.concatenate([a, b], axis=-1))


def relu_conv_bn(wp, x):
    return batch_norm(conv2d(x, wp, relu=True))


# ----------------------------------------------------------------------------
# Parameter construction (deterministic, synthetic, pre-laid-out for kernels)
# ----------------------------------------------------------------------------
class ParamGen:
    def __init__(self, seed):
        self._key = jax.random.PRNGKey(seed)
        self._n = 0

    def normal(self, shape, scale=0.1):
        self._n += 1
        k = jax.random.fold_in(self._key, self._n)
        return scale * jax.random.normal(k, shape, dtype=jnp.float32)


def make_dense_conv(pg, Cout, Cin, Kh, Kw, scale=0.1):
    w = pg.normal((Cout, Cin, Kh, Kw), scale)
    wm = jnp.transpose(w, (2, 3, 1, 0)).reshape(Kh * Kw * Cin, Cout)
    return {'w': wm.astype(jnp.bfloat16), 'kh': Kh, 'kw': Kw, 'cout': Cout}


def make_depthwise_conv(pg, C, K, scale=0.1):
    w = pg.normal((C, 1, K, K), scale)
    taps = jnp.transpose(w[:, 0], (1, 2, 0)).reshape(K * K, C)  # (K*K, C) f32
    return {'w': taps, 'k': K}


def make_channel_attention_params(pg, in_planes):
    return {'fc1': pg.normal((in_planes * 2, len(PRIMITIVES))),   # (2C, 10)
            'fc2': pg.normal((len(PRIMITIVES), in_planes))}       # (10, C)


def make_op_params(pg, prim, C, stride):
    if prim in ('none', 'max_pool_3x3', 'avg_pool_3x3'):
        return {}
    if prim == 'skip_connect':
        if stride == 1:
            return {}
        return {'fr1': make_dense_conv(pg, C // 2, C, 1, 1),
                'fr2': make_dense_conv(pg, C - C // 2, C, 1, 1)}
    if prim.startswith('sep_conv'):
        K = int(prim[-1])
        return {'dw1': make_depthwise_conv(pg, C, K),
                'pw1': make_dense_conv(pg, C, C, 1, 1),
                'dw2': make_depthwise_conv(pg, C, K),
                'pw2': make_dense_conv(pg, C, C, 1, 1)}
    if prim.startswith('dil_conv'):
        K = int(prim[-1])
        return {'dw': make_depthwise_conv(pg, C, K),
                'pw': make_dense_conv(pg, C, C, 1, 1)}
    if prim == 'conv_7x1_1x7':
        return {'w1': make_dense_conv(pg, C, C, 1, 7),
                'w2': make_dense_conv(pg, C, C, 7, 1)}
    raise ValueError(prim)


def make_mixed_op_params(pg, C, stride, layer_idx):
    k = K_LIST[layer_idx]
    c = C // k
    return {'ca': make_channel_attention_params(pg, C),
            'ops': [make_op_params(pg, prim, c, stride) for prim in PRIMITIVES],
            'k': k, 'stride': stride}


def make_cell_params(pg, steps, multiplier, Cpp, Cp, C,
                     reduction, reduction_prev, layer_idx):
    p = {'reduction': reduction, 'steps': steps, 'multiplier': multiplier}
    if reduction_prev:
        p['pre0'] = {'type': 'fr',
                     'fr1': make_dense_conv(pg, C // 2, Cpp, 1, 1),
                     'fr2': make_dense_conv(pg, C - C // 2, Cpp, 1, 1)}
    else:
        p['pre0'] = {'type': 'rcb', 'w': make_dense_conv(pg, C, Cpp, 1, 1)}
    p['pre1'] = {'w': make_dense_conv(pg, C, Cp, 1, 1)}
    ops = []
    for i in range(steps):
        for j in range(2 + i):
            stride = 2 if reduction and j < 2 else 1
            ops.append(make_mixed_op_params(pg, C, stride, layer_idx))
    p['ops'] = ops
    return p


def make_network_params(pg, C, num_classes, layers,
                        steps=4, multiplier=4, stem_multiplier=3):
    C_curr = stem_multiplier * C
    p = {'stem_w': make_dense_conv(pg, C_curr, 3, 3, 3),
         'steps': steps, 'multiplier': multiplier}
    Cpp, Cp, Cc = C_curr, C_curr, C
    cells = []
    reduction_prev = False
    for i in range(layers):
        if i in [layers // 3, 2 * layers // 3]:
            Cc *= 2
            reduction = True
        else:
            reduction = False
        cells.append(make_cell_params(pg, steps, multiplier, Cpp, Cp, Cc,
                                      reduction, reduction_prev, i))
        reduction_prev = reduction
        Cpp, Cp = Cp, multiplier * Cc
    p['cells'] = cells
    p['classifier_w'] = pg.normal((num_classes, Cp))
    p['classifier_b'] = jnp.zeros((num_classes,), jnp.float32)

    k = sum(1 for i in range(steps) for _ in range(2 + i))
    num_ops = len(PRIMITIVES)
    an = pg.normal((k, num_ops), scale=0.5).at[:, 7].set(1.0)
    ar = pg.normal((k, num_ops), scale=0.5).at[:, 7].set(1.0)
    p['alphas_normal'] = 0.001 * an
    p['alphas_reduce'] = 0.001 * ar
    p['betas_normal'] = 0.001 * pg.normal((k,), scale=1.0)
    p['betas_reduce'] = 0.001 * pg.normal((k,), scale=1.0)
    return p


# ----------------------------------------------------------------------------
# Forward pass (NHWC internally)
# ----------------------------------------------------------------------------
def channel_attention(p, x, gram):
    # Tiny (<=10-wide) matmuls stay in jnp.dot per review (no padded MXU call).
    avg = jnp.mean(x, axis=(1, 2))                   # AdaptiveAvgPool2d(1)
    mx = jnp.max(x, axis=(1, 2))                     # AdaptiveMaxPool2d(1)
    cat = jnp.concatenate([avg, mx], axis=1)         # (N, 2C)
    f1 = jnp.dot(cat, p['fc1'])                      # (N, 10)
    mixed = jnp.dot(f1, gram.T)                      # result[n] = gram @ f1[n]
    h = jnp.maximum(mixed, 0.0)
    out = jnp.dot(h, p['fc2'])                       # (N, C)
    return jax.nn.sigmoid(out)


def apply_op(prim, p, x, stride):
    if prim == 'none':
        return jnp.zeros_like(x[:, ::stride, ::stride, :])
    if prim == 'max_pool_3x3':
        return batch_norm(max_pool3(x, stride))
    if prim == 'avg_pool_3x3':
        return batch_norm(avg_pool3(x, stride))
    if prim == 'skip_connect':
        return x if stride == 1 else factorized_reduce(p, x)
    if prim.startswith('sep_conv'):
        K = p['dw1']['k']
        pad = K // 2
        h = depthwise_conv(x, p['dw1'], stride=stride, padding=pad, relu=True)
        h = batch_norm(conv2d(h, p['pw1']))
        h = depthwise_conv(h, p['dw2'], stride=1, padding=pad, relu=True)
        return batch_norm(conv2d(h, p['pw2']))
    if prim.startswith('dil_conv'):
        K = p['dw']['k']
        h = depthwise_conv(x, p['dw'], stride=stride, padding=K - 1,
                           dilation=2, relu=True)
        return batch_norm(conv2d(h, p['pw']))
    if prim == 'conv_7x1_1x7':
        h = conv2d(x, p['w1'], stride=(1, stride), padding=(0, 3), relu=True)
        h = conv2d(h, p['w2'], stride=(stride, 1), padding=(3, 0))
        return batch_norm(h)
    raise ValueError(prim)


def mixed_op(p, x, w_row, gram):
    C = x.shape[-1]
    stride = p['stride']
    num_list = channel_attention(p['ca'], x, gram)          # (N, C)
    x = x * num_list[:, None, None, :]
    slist = jnp.sum(num_list, axis=0)                        # (C,)
    _, idx = jax.lax.top_k(slist, C // p['k'])               # sorted, largest
    xtemp = jnp.take(x, idx, axis=3)
    temp1 = None
    for i, prim in enumerate(PRIMITIVES):
        o = w_row[i] * apply_op(prim, p['ops'][i], xtemp, stride)
        temp1 = o if temp1 is None else temp1 + o
    if temp1.shape[1] != x.shape[1]:
        x = max_pool2(x)
    return x.at[:, :, :, idx].set(temp1)


def cell_forward(p, s0, s1, weights, weights2, gram):
    if p['pre0']['type'] == 'fr':
        s0 = factorized_reduce(p['pre0'], s0)
    else:
        s0 = relu_conv_bn(p['pre0']['w'], s0)
    s1 = relu_conv_bn(p['pre1']['w'], s1)
    states = [s0, s1]
    offset = 0
    for _ in range(p['steps']):
        s = None
        for j, h in enumerate(states):
            out = weights2[offset + j] * mixed_op(
                p['ops'][offset + j], h, weights[offset + j], gram)
            s = out if s is None else s + out
        offset += len(states)
        states.append(s)
    return jnp.concatenate(states[-p['multiplier']:], axis=-1)


def _edge_softmax(betas, steps):
    n, start = 3, 2
    w2 = jax.nn.softmax(betas[0:2], axis=-1)
    for _ in range(steps - 1):
        end = start + n
        w2 = jnp.concatenate([w2, jax.nn.softmax(betas[start:end], axis=-1)],
                             axis=0)
        start = end
        n += 1
    return w2


def network_forward(p, x):
    x = jnp.transpose(x, (0, 2, 3, 1))                 # NCHW -> NHWC once
    s = batch_norm(conv2d(x, p['stem_w'], padding=1))  # stem conv + BN
    s0 = s1 = s
    steps = p['steps']
    wn = jax.nn.softmax(p['alphas_normal'], axis=-1)
    wr = jax.nn.softmax(p['alphas_reduce'], axis=-1)
    gram_n = jnp.dot(wn.T, wn)                         # hoisted out of CA
    gram_r = jnp.dot(wr.T, wr)
    w2n = _edge_softmax(p['betas_normal'], steps)
    w2r = _edge_softmax(p['betas_reduce'], steps)
    for cell in p['cells']:
        if cell['reduction']:
            weights, weights2, gram = wr, w2r, gram_r
        else:
            weights, weights2, gram = wn, w2n, gram_n
        s0, s1 = s1, cell_forward(cell, s0, s1, weights, weights2, gram)
    out = jnp.mean(s1, axis=(1, 2))                    # global avg pool
    logits = jnp.dot(out, p['classifier_w'].T) + p['classifier_b'][None, :]
    return logits


# ----------------------------------------------------------------------------
if __name__ == "__main__":
    key = jax.random.PRNGKey(0)
    pg = ParamGen(1)
    # Small config: C=8, num_classes=10, layers=2, steps=2, multiplier=2.
    params = make_network_params(pg, C=8, num_classes=10, layers=2,
                                 steps=2, multiplier=2, stem_multiplier=3)
    x = jax.random.normal(key, (2, 3, 16, 16), dtype=jnp.float32)
    logits = network_forward(params, x)
    logits = jax.block_until_ready(logits)
    assert logits.shape == (2, 10)
    assert bool(jnp.all(jnp.isfinite(logits)))
    print("KERNEL_OK")
</pallas_src>

<mosaic_0001>
module attributes {stable_mosaic.version = 11 : i64} {
  func.func @_matmul_kernel(%arg0: i32, %arg1: i32, %arg2: i32, %arg3: memref<512x128xbf16, #tpu.memory_space<vmem>>, %arg4: memref<128x128xbf16, #tpu.memory_space<vmem>>, %arg5: memref<512x128xf32, #tpu.memory_space<vmem>>, %arg6: memref<512x128xf32, #tpu.memory_space<vmem>>) attributes {dimension_semantics = [#tpu.dimension_semantics<parallel>, #tpu.dimension_semantics<parallel>, #tpu.dimension_semantics<arbitrary>], iteration_bounds = array<i64: 1, 1, 1>, scalar_prefetch = 0 : i64, scratch_operands = 1 : i64, tpu.core_type = #tpu.core_type<tc>, window_params = [{transform_indices = @transform_0, window_bounds = array<i64: 512, 128>}, {transform_indices = @transform_1, window_bounds = array<i64: 128, 128>}, {transform_indices = @transform_2, window_bounds = array<i64: 512, 128>}]} {
    %c0_i32 = arith.constant 0 : i32
    %0 = arith.cmpi eq, %arg2, %c0_i32 : i32
    %1 = arith.extui %0 : i1 to i32
    %c0_i32_0 = arith.constant 0 : i32
    %2 = arith.cmpi ne, %1, %c0_i32_0 : i32
    scf.if %2 {
      %cst_10 = arith.constant 0.000000e+00 : f32
      %12 = vector.broadcast %cst_10 : f32 to vector<512x128xf32>
      %c0_11 = arith.constant 0 : index
      %c0_12 = arith.constant 0 : index
      %13 = vector.load %arg6[%c0_11, %c0_12] : memref<512x128xf32, #tpu.memory_space<vmem>>, vector<512x128xf32>
      tpu.vector_store %arg6[%c0_11, %c0_12], %12 {strides = array<i32>} : memref<512x128xf32, #tpu.memory_space<vmem>>, vector<512x128xf32>,
    } else {
    }
    %c0 = arith.constant 0 : index
    %c0_1 = arith.constant 0 : index
    %3 = vector.load %arg3[%c0, %c0_1] : memref<512x128xbf16, #tpu.memory_space<vmem>>, vector<512x128xbf16>
    %c0_2 = arith.constant 0 : index
    %c0_3 = arith.constant 0 : index
    %4 = vector.load %arg6[%c0_2, %c0_3] : memref<512x128xf32, #tpu.memory_space<vmem>>, vector<512x128xf32>
    %c0_4 = arith.constant 0 : index
    %c0_5 = arith.constant 0 : index
    %5 = vector.load %arg4[%c0_4, %c0_5] : memref<128x128xbf16, #tpu.memory_space<vmem>>, vector<128x128xbf16>
    %cst = arith.constant dense<0.000000e+00> : vector<512x128xf32>
    %6 = tpu.matmul %3, %5, %cst {dimension_numbers = #tpu.dot_dimension_numbers<[1], [0], [0], [1], [0, 0, 1, 1], [], []>} : vector<512x128xbf16>, vector<128x128xbf16>, vector<512x128xf32> -> vector<512x128xf32>
    %7 = arith.addf %4, %6 : vector<512x128xf32>
    %c0_6 = arith.constant 0 : index
    %c0_7 = arith.constant 0 : index
    %8 = vector.load %arg6[%c0_6, %c0_7] : memref<512x128xf32, #tpu.memory_space<vmem>>, vector<512x128xf32>
    tpu.vector_store %arg6[%c0_6, %c0_7], %7 {strides = array<i32>} : memref<512x128xf32, #tpu.memory_space<vmem>>, vector<512x128xf32>,
    %c0_i32_8 = arith.constant 0 : i32
    %9 = arith.cmpi eq, %arg2, %c0_i32_8 : i32
    %10 = arith.extui %9 : i1 to i32
    %c0_i32_9 = arith.constant 0 : i32
    %11 = arith.cmpi ne, %10, %c0_i32_9 : i32
    scf.if %11 {
      %c0_10 = arith.constant 0 : index
      %c0_11 = arith.constant 0 : index
      %12 = vector.load %arg6[%c0_10, %c0_11] : memref<512x128xf32, #tpu.memory_space<vmem>>, vector<512x128xf32>
      %c0_12 = arith.constant 0 : index
      %c0_13 = arith.constant 0 : index
      %13 = vector.load %arg5[%c0_12, %c0_13] : memref<512x128xf32, #tpu.memory_space<vmem>>, vector<512x128xf32>
      tpu.vector_store %arg5[%c0_12, %c0_13], %12 {strides = array<i32>} : memref<512x128xf32, #tpu.memory_space<vmem>>, vector<512x128xf32>,
    } else {
    }
    return
  }
  func.func @transform_0(%arg0: i32, %arg1: i32, %arg2: i32) -> (i32, i32) {
    %c0_i32 = arith.constant 0 : i32
    return %arg0, %arg2 : i32, i32
  }
  func.func @transform_1(%arg0: i32, %arg1: i32, %arg2: i32) -> (i32, i32) {
    %c0_i32 = arith.constant 0 : i32
    return %arg2, %arg1 : i32, i32
  }
  func.func @transform_2(%arg0: i32, %arg1: i32, %arg2: i32) -> (i32, i32) {
    %c0_i32 = arith.constant 0 : i32
    return %arg0, %arg1 : i32, i32
  }
}

</mosaic_0001>

<bundles_post_ra>
// kernel: tpu_custom_call.1
= control target key start
LH: loop header
LB: loop body
LE: loop exit
PB: predicated region body
PF: predicated region fallthrough
CT: control target
= control target key end

     0   :  { %7 = vsyncpa [#allocation4], 0  ;;  %s1412_s0 = inlined_call_operand.hbm [shape: bf16[512,128], index: 0, kind: input, shape index: {}]   ;;  %s1413_s1 = inlined_call_operand.hbm [shape: bf16[128,128], index: 1, kind: input, shape index: {}]   ;;  %s1414_s2 = inlined_call_operand.hbm [shape: f32[512,128], index: 2, kind: output, shape index: {}]  }
   0x1   :  { %8 = vsyncpa [#allocation7], 0 }
   0x2   :  { %9 = vsyncpa [#allocation5], 0  ;;  %s1354_s9 = smov [#allocation3]   ;;  %s1282_s13 = scalar_lea.hbm %s1412_s0, 4096 }
   0x3   :  { %s15_s10 = sshll.u32 %s1354_s9, 4  ;;  %p1283_p0 = scmp.ne.s32.totalorder %s1412_s0, %s1282_s13  ;;  %s16_s10 = int_to_ptr.vmem [resolvable:$true] %s15_s10 }
   0x4   :  { %p1286_p1 = scmp.lt.u32.totalorder %s1282_s13, %s1412_s0 }
   0x6   :  { %p1288_p2 = pnand %p1286_p1, %p1283_p0 }
   0x8   :  { %1291 = shalt.err (!%p1288_p2)
}
   0x9   :  { %s1292_s18 = scalar_lea.vmem %s16_s10, 4096  ;;  %p1297_p4 = scmp.lt.s32.totalorder %s16_s10, %s16_s10 }
   0xa   :  { %p1293_p3 = scmp.ne.s32.totalorder %s16_s10, %s1292_s18  ;;  %p1298_p5 = scmp.lt.s32.totalorder %s1292_s18, %s1292_s18 }
   0xc   :  { %p1299_p6 = por %p1298_p5, %p1297_p4 }
   0xe   :  { %p1300_p7 = pnand %p1299_p6, %p1293_p3 }
  0x10   :  { %1303 = shalt.err (!%p1300_p7)
}
  0x11   :  { %s1355_s19 = smov 64   ;;  %s1356_s20 = smov 4  }
  0x12   :  { %21 = dma.hbm_to_vmem [thread:$0]  %s1412_s0, 4096, %s16_s10, [#allocation4], %s1355_s19, %s1355_s19, %s1356_s20  }
  0x13   :  { %s1357_s23 = smov [#allocation6]   ;;  %s1304_s27 = scalar_lea.hbm %s1413_s1, 1024 }
  0x14   :  { %s27_s24 = sshll.u32 %s1357_s23, 4  ;;  %p1305_p8 = scmp.ne.s32.totalorder %s1413_s1, %s1304_s27  ;;  %s28_s24 = int_to_ptr.vmem [resolvable:$true] %s27_s24 }
  0x15   :  { %p1308_p9 = scmp.lt.u32.totalorder %s1304_s27, %s1413_s1 }
  0x17   :  { %p1310_p10 = pnand %p1308_p9, %p1305_p8 }
  0x19   :  { %1313 = shalt.err (!%p1310_p10)
}
  0x1a   :  { %s1314_s4 = scalar_lea.vmem %s28_s24, 1024  ;;  %p1319_p12 = scmp.lt.s32.totalorder %s28_s24, %s28_s24 }
  0x1b   :  { %p1315_p11 = scmp.ne.s32.totalorder %s28_s24, %s1314_s4  ;;  %p1320_p13 = scmp.lt.s32.totalorder %s1314_s4, %s1314_s4 }
  0x1d   :  { %p1321_p0 = por %p1320_p13, %p1319_p12 }
  0x1f   :  { %p1322_p1 = pnand %p1321_p0, %p1315_p11 }
  0x21   :  { %1325 = shalt.err (!%p1322_p1)
}
  0x22   :  { %33 = dma.hbm_to_vmem [thread:$0]  %s1413_s1, 1024, %s28_s24, [#allocation7], %s1355_s19, %s1355_s19, %s1356_s20  }
  0x23   :  { %1348 = dma.done.wait [#allocation4], 4096  }
  0x24   :  { %1349 = vsyncadd [#allocation4], 4294963200 }
  0x25   :  { %1350 = dma.done.wait [#allocation7], 1024  }
  0x26   :  { %1351 = vsyncadd [#allocation7], 4294966272  ;;  %v1242_v0 = vld [vmem:[#allocation6] sm:$0xff]   ;;  %v1243_v1 = vld [vmem:[#allocation6 + $0x8] sm:$0xff]   ;;  %s1358_s1 = smov [#allocation8]  }
  0x27   :  { %1139 = vmatprep.subr.bf16.mxu0 %v1242_v0  ;;  %1219 = vmatprep.subr.bf16.mxu1 %v1242_v0  ;;  %v1244_v2 = vld [vmem:[#allocation6 + $0x10] sm:$0xff]   ;;  %v1245_v3 = vld [vmem:[#allocation6 + $0x18] sm:$0xff]   ;;  %v1250_v4 = vld [vmem:[#allocation3] sm:$0xff]   ;;  %s1046_s6 = sshll.u32 %s1358_s1, 4  ;;  %s1047_s6 = int_to_ptr.vmem [resolvable:$true] %s1046_s6 }
  0x28   :  { %1140 = vmatpush3.bf16.msra.mxu0 %v1242_v0  ;;  %1227 = vmatpush3.bf16.msra.mxu1 %v1242_v0  ;;  %v1251_v5 = vld [vmem:[#allocation3 + $0x80] sm:$0xff]   ;;  %v1247_v7 = vld [vmem:[#allocation6 + $0x28] sm:$0xff]   ;;  %v1248_v8 = vld [vmem:[#allocation6 + $0x30] sm:$0xff]   ;;  %s1326_s7 = scalar_lea.vmem %s1047_s6, 8192  ;;  %p1331_p3 = scmp.lt.s32.totalorder %s1047_s6, %s1047_s6 }
  0x29   :  { %1141 = vmatprep.subr.bf16.mxu0 %v1243_v1  ;;  %1220 = vmatprep.subr.bf16.mxu1 %v1243_v1  ;;  %v1246_v6 = vld [vmem:[#allocation6 + $0x20] sm:$0xff]   ;;  %v1249_v9 = vld [vmem:[#allocation6 + $0x38] sm:$0xff]   ;;  %v1252_v10 = vld [vmem:[#allocation3 + $0x8] sm:$0xff]   ;;  %p1327_p2 = scmp.ne.s32.totalorder %s1047_s6, %s1326_s7  ;;  %p1332_p4 = scmp.lt.s32.totalorder %s1326_s7, %s1326_s7 }
  0x2a   :  { %1155 = vmatprep.mubr.bf16.mxu0 %v1250_v4  ;;  %1187 = vmatprep.mubr.bf16.mxu1 %v1251_v5  ;;  %v1253_v11 = vld [vmem:[#allocation3 + $0x88] sm:$0xff]   ;;  %v1254_v12 = vld [vmem:[#allocation3 + $0x10] sm:$0xff]   ;;  %v1256_v14 = vld [vmem:[#allocation3 + $0x18] sm:$0xff]  }
  0x2b   :  { %v1255_v13 = vld [vmem:[#allocation3 + $0x90] sm:$0xff]   ;;  %v1257_v15 = vld [vmem:[#allocation3 + $0x98] sm:$0xff]   ;;  %v1258_v16 = vld [vmem:[#allocation3 + $0x20] sm:$0xff]   ;;  %p1333_p5 = por %p1332_p4, %p1331_p3 }
  0x2c   :  { %1142 = vmatpush3.bf16.msra.mxu0 %v1243_v1  ;;  %1228 = vmatpush3.bf16.msra.mxu1 %v1243_v1  ;;  %v1259_v17 = vld [vmem:[#allocation3 + $0xa0] sm:$0xff]   ;;  %v1260_v18 = vld [vmem:[#allocation3 + $0x28] sm:$0xff]   ;;  %v1262_v20 = vld [vmem:[#allocation3 + $0x30] sm:$0xff]  }
  0x2d   :  { %1143 = vmatprep.subr.bf16.mxu0 %v1244_v2  ;;  %1221 = vmatprep.subr.bf16.mxu1 %v1244_v2  ;;  %v1261_v19 = vld [vmem:[#allocation3 + $0xa8] sm:$0xff]   ;;  %v1263_v21 = vld [vmem:[#allocation3 + $0xb0] sm:$0xff]   ;;  %v1264_v22 = vld [vmem:[#allocation3 + $0x38] sm:$0xff]   ;;  %p1334_p6 = pnand %p1333_p5, %p1327_p2 }
  0x2e   :  { %v1265_v23 = vld [vmem:[#allocation3 + $0xb8] sm:$0xff]   ;;  %v1266_v24 = vld [vmem:[#allocation3 + $0x40] sm:$0xff]   ;;  %v1268_v26 = vld [vmem:[#allocation3 + $0x48] sm:$0xff]  }
  0x2f   :  { %v1267_v25 = vld [vmem:[#allocation3 + $0xc0] sm:$0xff]   ;;  %v1269_v27 = vld [vmem:[#allocation3 + $0xc8] sm:$0xff]   ;;  %v1270_v28 = vld [vmem:[#allocation3 + $0x50] sm:$0xff]  }
  0x30   :  { %1144 = vmatpush3.bf16.msra.mxu0 %v1244_v2  ;;  %1229 = vmatpush3.bf16.msra.mxu1 %v1244_v2  ;;  %v1271_v29 = vld [vmem:[#allocation3 + $0xd0] sm:$0xff]   ;;  %v1272_v30 = vld [vmem:[#allocation3 + $0x58] sm:$0xff]   ;;  %v1274_v32 = vld [vmem:[#allocation3 + $0x60] sm:$0xff]  }
  0x31   :  { %1145 = vmatprep.subr.bf16.mxu0 %v1245_v3  ;;  %1222 = vmatprep.subr.bf16.mxu1 %v1245_v3  ;;  %v1273_v31 = vld [vmem:[#allocation3 + $0xd8] sm:$0xff]   ;;  %v1275_v33 = vld [vmem:[#allocation3 + $0xe0] sm:$0xff]   ;;  %v1276_v34 = vld [vmem:[#allocation3 + $0x68] sm:$0xff]  }
  0x32   :  { %v1277_v35 = vld [vmem:[#allocation3 + $0xe8] sm:$0xff]   ;;  %v1278_v36 = vld [vmem:[#allocation3 + $0x70] sm:$0xff]   ;;  %v1280_v38 = vld [vmem:[#allocation3 + $0x78] sm:$0xff]  }
  0x33   :  { %v1279_v37 = vld [vmem:[#allocation3 + $0xf0] sm:$0xff]   ;;  %v1281_v39 = vld [vmem:[#allocation3 + $0xf8] sm:$0xff]  }
  0x34   :  { %1146 = vmatpush3.bf16.msra.mxu0 %v1245_v3  ;;  %1230 = vmatpush3.bf16.msra.mxu1 %v1245_v3 }
  0x35   :  { %1147 = vmatprep.subr.bf16.mxu0 %v1246_v6  ;;  %1223 = vmatprep.subr.bf16.mxu1 %v1246_v6 }
  0x38   :  { %1148 = vmatpush3.bf16.msra.mxu0 %v1246_v6  ;;  %1231 = vmatpush3.bf16.msra.mxu1 %v1246_v6 }
  0x39   :  { %1149 = vmatprep.subr.bf16.mxu0 %v1247_v7  ;;  %1224 = vmatprep.subr.bf16.mxu1 %v1247_v7 }
  0x3c   :  { %1150 = vmatpush3.bf16.msra.mxu0 %v1247_v7  ;;  %1232 = vmatpush3.bf16.msra.mxu1 %v1247_v7 }
  0x3d   :  { %1151 = vmatprep.subr.bf16.mxu0 %v1248_v8  ;;  %1225 = vmatprep.subr.bf16.mxu1 %v1248_v8 }
  0x40   :  { %1152 = vmatpush3.bf16.msra.mxu0 %v1248_v8  ;;  %1233 = vmatpush3.bf16.msra.mxu1 %v1248_v8 }
  0x41   :  { %1153 = vmatprep.subr.bf16.mxu0 %v1249_v9  ;;  %1226 = vmatprep.subr.bf16.mxu1 %v1249_v9 }
  0x44   :  { %1154 = vmatpush3.bf16.msra.mxu0 %v1249_v9  ;;  %1234 = vmatpush3.bf16.msra.mxu1 %v1249_v9 }
  0x47   :  { %1156 = vmatmul.mubr.bf16.vlgmr.msra.gmra.mrb[0].mxu0 %v1252_v10  ;;  %1188 = vmatmul.mubr.bf16.vlgmr.msra.gmra.mrb[0].mxu1 %v1253_v11 }
  0x48   :  { %1159 = vmatprep.mubr.bf16.mxu0 %v1254_v12  ;;  %1191 = vmatprep.mubr.bf16.mxu1 %v1255_v13 }
  0x4f   :  { %1160 = vmatmul.mubr.bf16.gmra.mrb[4].mxu0 %v1256_v14  ;;  %1192 = vmatmul.mubr.bf16.gmra.mrb[4].mxu1 %v1257_v15 }
  0x50   :  { %1163 = vmatprep.mubr.bf16.mxu0 %v1258_v16  ;;  %1195 = vmatprep.mubr.bf16.mxu1 %v1259_v17 }
  0x57   :  { %1164 = vmatmul.mubr.bf16.gmra.mrb[8].mxu0 %v1260_v18  ;;  %1196 = vmatmul.mubr.bf16.gmra.mrb[8].mxu1 %v1261_v19 }
  0x58   :  { %1167 = vmatprep.mubr.bf16.mxu0 %v1262_v20  ;;  %1199 = vmatprep.mubr.bf16.mxu1 %v1263_v21 }
  0x5f   :  { %1168 = vmatmul.mubr.bf16.gmra.mrb[12].mxu0 %v1264_v22  ;;  %1200 = vmatmul.mubr.bf16.gmra.mrb[12].mxu1 %v1265_v23 }
  0x60   :  { %1171 = vmatprep.mubr.bf16.mxu0 %v1266_v24  ;;  %1203 = vmatprep.mubr.bf16.mxu1 %v1267_v25 }
  0x67   :  { %1172 = vmatmul.mubr.bf16.gmra.mrb[16].mxu0 %v1268_v26  ;;  %1204 = vmatmul.mubr.bf16.gmra.mrb[16].mxu1 %v1269_v27 }
  0x68   :  { %1175 = vmatprep.mubr.bf16.mxu0 %v1270_v28  ;;  %1207 = vmatprep.mubr.bf16.mxu1 %v1271_v29 }
  0x6f   :  { %1176 = vmatmul.mubr.bf16.gmra.mrb[20].mxu0 %v1272_v30  ;;  %1208 = vmatmul.mubr.bf16.gmra.mrb[20].mxu1 %v1273_v31 }
  0x70   :  { %1179 = vmatprep.mubr.bf16.mxu0 %v1274_v32  ;;  %1211 = vmatprep.mubr.bf16.mxu1 %v1275_v33 }
  0x77   :  { %1180 = vmatmul.mubr.bf16.gmra.mrb[24].mxu0 %v1276_v34  ;;  %1212 = vmatmul.mubr.bf16.gmra.mrb[24].mxu1 %v1277_v35 }
  0x78   :  { %1183 = vmatprep.mubr.bf16.mxu0 %v1278_v36  ;;  %1215 = vmatprep.mubr.bf16.mxu1 %v1279_v37 }
  0x7f   :  { %1184 = vmatmul.mubr.bf16.gmra.mrb[28].mxu0 %v1280_v38  ;;  %1216 = vmatmul.mubr.bf16.gmra.mrb[28].mxu1 %v1281_v39 }
 0x11a   :  { %v1157_v40 = vpop.f32.mrb[0].mxu0  ;;  %v1189_v41 = vpop.f32.mrb[0].mxu1 }
 0x11b   :  { %979 = vst [vmem:[#allocation8 + $0x10] sm:$0xff] %v1157_v40  ;;  %1011 = vst [vmem:[#allocation8 + $0x110] sm:$0xff] %v1189_v41  ;;  %v527_v42 = vpop.f32.mrb[1].mxu0  ;;  %v655_v43 = vpop.f32.mrb[1].mxu1 }
 0x11c   :  { %977 = vst [vmem:[#allocation8] sm:$0xff] %v527_v42  ;;  %1009 = vst [vmem:[#allocation8 + $0x100] sm:$0xff] %v655_v43  ;;  %v1158_v44 = vpop.f32.mrb[2].mxu0  ;;  %v1190_v45 = vpop.f32.mrb[2].mxu1 }
 0x11d   :  { %980 = vst [vmem:[#allocation8 + $0x18] sm:$0xff] %v1158_v44  ;;  %1012 = vst [vmem:[#allocation8 + $0x118] sm:$0xff] %v1190_v45  ;;  %v530_v46 = vpop.f32.mrb[3].mxu0  ;;  %v658_v47 = vpop.f32.mrb[3].mxu1 }
 0x11e   :  { %978 = vst [vmem:[#allocation8 + $0x8] sm:$0xff] %v530_v46  ;;  %1010 = vst [vmem:[#allocation8 + $0x108] sm:$0xff] %v658_v47 }
 0x122   :  { %v1161_v48 = vpop.f32.mrb[4].mxu0  ;;  %v1193_v49 = vpop.f32.mrb[4].mxu1 }
 0x123   :  { %983 = vst [vmem:[#allocation8 + $0x30] sm:$0xff] %v1161_v48  ;;  %1015 = vst [vmem:[#allocation8 + $0x130] sm:$0xff] %v1193_v49  ;;  %v543_v50 = vpop.f32.mrb[5].mxu0  ;;  %v671_v51 = vpop.f32.mrb[5].mxu1 }
 0x124   :  { %981 = vst [vmem:[#allocation8 + $0x20] sm:$0xff] %v543_v50  ;;  %1013 = vst [vmem:[#allocation8 + $0x120] sm:$0xff] %v671_v51  ;;  %v1162_v52 = vpop.f32.mrb[6].mxu0  ;;  %v1194_v53 = vpop.f32.mrb[6].mxu1 }
 0x125   :  { %984 = vst [vmem:[#allocation8 + $0x38] sm:$0xff] %v1162_v52  ;;  %1016 = vst [vmem:[#allocation8 + $0x138] sm:$0xff] %v1194_v53  ;;  %v546_v54 = vpop.f32.mrb[7].mxu0  ;;  %v674_v55 = vpop.f32.mrb[7].mxu1 }
 0x126   :  { %982 = vst [vmem:[#allocation8 + $0x28] sm:$0xff] %v546_v54  ;;  %1014 = vst [vmem:[#allocation8 + $0x128] sm:$0xff] %v674_v55 }
 0x12a   :  { %v1165_v56 = vpop.f32.mrb[8].mxu0  ;;  %v1197_v57 = vpop.f32.mrb[8].mxu1 }
 0x12b   :  { %987 = vst [vmem:[#allocation8 + $0x50] sm:$0xff] %v1165_v56  ;;  %1019 = vst [vmem:[#allocation8 + $0x150] sm:$0xff] %v1197_v57  ;;  %v559_v58 = vpop.f32.mrb[9].mxu0  ;;  %v687_v59 = vpop.f32.mrb[9].mxu1 }
 0x12c   :  { %985 = vst [vmem:[#allocation8 + $0x40] sm:$0xff] %v559_v58  ;;  %1017 = vst [vmem:[#allocation8 + $0x140] sm:$0xff] %v687_v59  ;;  %v1166_v60 = vpop.f32.mrb[10].mxu0  ;;  %v1198_v61 = vpop.f32.mrb[10].mxu1 }
 0x12d   :  { %988 = vst [vmem:[#allocation8 + $0x58] sm:$0xff] %v1166_v60  ;;  %1020 = vst [vmem:[#allocation8 + $0x158] sm:$0xff] %v1198_v61  ;;  %v562_v62 = vpop.f32.mrb[11].mxu0  ;;  %v690_v63 = vpop.f32.mrb[11].mxu1 }
 0x12e   :  { %986 = vst [vmem:[#allocation8 + $0x48] sm:$0xff] %v562_v62  ;;  %1018 = vst [vmem:[#allocation8 + $0x148] sm:$0xff] %v690_v63 }
 0x132   :  { %v1169_v0 = vpop.f32.mrb[12].mxu0  ;;  %v1201_v1 = vpop.f32.mrb[12].mxu1 }
 0x133   :  { %991 = vst [vmem:[#allocation8 + $0x70] sm:$0xff] %v1169_v0  ;;  %1023 = vst [vmem:[#allocation8 + $0x170] sm:$0xff] %v1201_v1  ;;  %v575_v2 = vpop.f32.mrb[13].mxu0  ;;  %v703_v3 = vpop.f32.mrb[13].mxu1 }
 0x134   :  { %989 = vst [vmem:[#allocation8 + $0x60] sm:$0xff] %v575_v2  ;;  %1021 = vst [vmem:[#allocation8 + $0x160] sm:$0xff] %v703_v3  ;;  %v1170_v4 = vpop.f32.mrb[14].mxu0  ;;  %v1202_v5 = vpop.f32.mrb[14].mxu1 }
 0x135   :  { %992 = vst [vmem:[#allocation8 + $0x78] sm:$0xff] %v1170_v4  ;;  %1024 = vst [vmem:[#allocation8 + $0x178] sm:$0xff] %v1202_v5  ;;  %v578_v6 = vpop.f32.mrb[15].mxu0  ;;  %v706_v7 = vpop.f32.mrb[15].mxu1 }
 0x136   :  { %990 = vst [vmem:[#allocation8 + $0x68] sm:$0xff] %v578_v6  ;;  %1022 = vst [vmem:[#allocation8 + $0x168] sm:$0xff] %v706_v7 }
 0x13a   :  { %v1173_v8 = vpop.f32.mrb[16].mxu0  ;;  %v1205_v9 = vpop.f32.mrb[16].mxu1 }
 0x13b   :  { %995 = vst [vmem:[#allocation8 + $0x90] sm:$0xff] %v1173_v8  ;;  %1027 = vst [vmem:[#allocation8 + $0x190] sm:$0xff] %v1205_v9  ;;  %v591_v10 = vpop.f32.mrb[17].mxu0  ;;  %v719_v11 = vpop.f32.mrb[17].mxu1 }
 0x13c   :  { %993 = vst [vmem:[#allocation8 + $0x80] sm:$0xff] %v591_v10  ;;  %1025 = vst [vmem:[#allocation8 + $0x180] sm:$0xff] %v719_v11  ;;  %v1174_v12 = vpop.f32.mrb[18].mxu0  ;;  %v1206_v13 = vpop.f32.mrb[18].mxu1 }
 0x13d   :  { %996 = vst [vmem:[#allocation8 + $0x98] sm:$0xff] %v1174_v12  ;;  %1028 = vst [vmem:[#allocation8 + $0x198] sm:$0xff] %v1206_v13  ;;  %v594_v14 = vpop.f32.mrb[19].mxu0  ;;  %v722_v15 = vpop.f32.mrb[19].mxu1 }
 0x13e   :  { %994 = vst [vmem:[#allocation8 + $0x88] sm:$0xff] %v594_v14  ;;  %1026 = vst [vmem:[#allocation8 + $0x188] sm:$0xff] %v722_v15 }
 0x142   :  { %v1177_v16 = vpop.f32.mrb[20].mxu0  ;;  %v1209_v17 = vpop.f32.mrb[20].mxu1 }
 0x143   :  { %999 = vst [vmem:[#allocation8 + $0xb0] sm:$0xff] %v1177_v16  ;;  %1031 = vst [vmem:[#allocation8 + $0x1b0] sm:$0xff] %v1209_v17  ;;  %v607_v18 = vpop.f32.mrb[21].mxu0  ;;  %v735_v19 = vpop.f32.mrb[21].mxu1 }
 0x144   :  { %997 = vst [vmem:[#allocation8 + $0xa0] sm:$0xff] %v607_v18  ;;  %1029 = vst [vmem:[#allocation8 + $0x1a0] sm:$0xff] %v735_v19  ;;  %v1178_v20 = vpop.f32.mrb[22].mxu0  ;;  %v1210_v21 = vpop.f32.mrb[22].mxu1 }
 0x145   :  { %1000 = vst [vmem:[#allocation8 + $0xb8] sm:$0xff] %v1178_v20  ;;  %1032 = vst [vmem:[#allocation8 + $0x1b8] sm:$0xff] %v1210_v21  ;;  %v610_v22 = vpop.f32.mrb[23].mxu0  ;;  %v738_v23 = vpop.f32.mrb[23].mxu1 }
 0x146   :  { %998 = vst [vmem:[#allocation8 + $0xa8] sm:$0xff] %v610_v22  ;;  %1030 = vst [vmem:[#allocation8 + $0x1a8] sm:$0xff] %v738_v23 }
 0x14a   :  { %v1181_v24 = vpop.f32.mrb[24].mxu0  ;;  %v1213_v25 = vpop.f32.mrb[24].mxu1 }
 0x14b   :  { %1003 = vst [vmem:[#allocation8 + $0xd0] sm:$0xff] %v1181_v24  ;;  %1035 = vst [vmem:[#allocation8 + $0x1d0] sm:$0xff] %v1213_v25  ;;  %v623_v26 = vpop.f32.mrb[25].mxu0  ;;  %v751_v27 = vpop.f32.mrb[25].mxu1 }
 0x14c   :  { %1001 = vst [vmem:[#allocation8 + $0xc0] sm:$0xff] %v623_v26  ;;  %1033 = vst [vmem:[#allocation8 + $0x1c0] sm:$0xff] %v751_v27  ;;  %v1182_v28 = vpop.f32.mrb[26].mxu0  ;;  %v1214_v29 = vpop.f32.mrb[26].mxu1 }
 0x14d   :  { %1004 = vst [vmem:[#allocation8 + $0xd8] sm:$0xff] %v1182_v28  ;;  %1036 = vst [vmem:[#allocation8 + $0x1d8] sm:$0xff] %v1214_v29  ;;  %v626_v30 = vpop.f32.mrb[27].mxu0  ;;  %v754_v31 = vpop.f32.mrb[27].mxu1 }
 0x14e   :  { %1002 = vst [vmem:[#allocation8 + $0xc8] sm:$0xff] %v626_v30  ;;  %1034 = vst [vmem:[#allocation8 + $0x1c8] sm:$0xff] %v754_v31 }
 0x152   :  { %v1185_v32 = vpop.f32.mrb[28].mxu0  ;;  %v1217_v33 = vpop.f32.mrb[28].mxu1 }
 0x153   :  { %1007 = vst [vmem:[#allocation8 + $0xf0] sm:$0xff] %v1185_v32  ;;  %1039 = vst [vmem:[#allocation8 + $0x1f0] sm:$0xff] %v1217_v33  ;;  %v639_v34 = vpop.f32.mrb[29].mxu0  ;;  %v767_v35 = vpop.f32.mrb[29].mxu1 }
 0x154   :  { %1005 = vst [vmem:[#allocation8 + $0xe0] sm:$0xff] %v639_v34  ;;  %1037 = vst [vmem:[#allocation8 + $0x1e0] sm:$0xff] %v767_v35  ;;  %v1186_v36 = vpop.f32.mrb[30].mxu0  ;;  %v1218_v37 = vpop.f32.mrb[30].mxu1 }
 0x155   :  { %1008 = vst [vmem:[#allocation8 + $0xf8] sm:$0xff] %v1186_v36  ;;  %1040 = vst [vmem:[#allocation8 + $0x1f8] sm:$0xff] %v1218_v37  ;;  %v642_v38 = vpop.f32.mrb[31].mxu0  ;;  %v770_v39 = vpop.f32.mrb[31].mxu1 }
 0x156   :  { %1006 = vst [vmem:[#allocation8 + $0xe8] sm:$0xff] %v642_v38  ;;  %1038 = vst [vmem:[#allocation8 + $0x1e8] sm:$0xff] %v770_v39 }
 0x157   :  { %1337 = shalt.err (!%p1334_p6)
}
 0x158   :  { %s1338_s10 = scalar_lea.hbm %s1414_s2, 8192 }
 0x159   :  { %p1339_p7 = scmp.ne.s32.totalorder %s1414_s2, %s1338_s10  ;;  %p1342_p8 = scmp.lt.u32.totalorder %s1338_s10, %s1414_s2 }
 0x15b   :  { %p1344_p9 = pnand %p1342_p8, %p1339_p7 }
 0x15d   :  { %1347 = shalt.err (!%p1344_p9)
}
 0x15e   :  { %s1359_s15 = smov 128   ;;  %s1360_s16 = smov 8  }
 0x15f   :  { %1052 = dma.vmem_to_hbm [thread:$0]  %s1047_s6, 8192, %s1414_s2, [#allocation5], %s1359_s15, %s1359_s15, %s1360_s16  }
 0x160   :  { %1352 = dma.done.wait [#allocation5], 8192  }
 0x161   :  { %1353 = vsyncadd [#allocation5], 4294959104 }
 0x162   :  { %1056 = vsyncpa [#allocation4], 1 }
 0x163   :  { %1057 = vsyncpa [#allocation7], 1 }
 0x164   :  { %1058 = vsyncpa [#allocation5], 1 }

</bundles_post_ra>
